<compile_context>
chip_gen: v5e
topology: v5e:2x2
jax: 0.10.0
libtpu: 0.0.40
codegen_flags: <defaults>
</compile_context>

<pallas_src>
import math
from functools import partial

import jax
import jax.numpy as jnp
from jax.experimental import pallas as pl
from jax.experimental.pallas import tpu as pltpu

_INV_SQRT2 = 1.0 / math.sqrt(2.0)
_MXU_M = 256          # target M rows per MXU pass (v6e/v7x); fine on v5e too


def _round_up(n, m):
    return ((n + m - 1) // m) * m


def _vmem_tile_bytes(shape, itemsize=4):
    """Conservative VMEM footprint of one buffer, padded to (8,128) tiles."""
    shape = tuple(int(s) for s in shape)
    if len(shape) == 0:
        return 8 * 128 * itemsize
    if len(shape) == 1:
        return 8 * _round_up(shape[0], 128) * itemsize
    lead = 1
    for d in shape[:-2]:
        lead *= d
    return lead * _round_up(shape[-2], 8) * _round_up(shape[-1], 128) * itemsize


def _gelu_erf(x):
    # Exact-erf GELU (torch default): 0.5*x*(1 + erf(x/sqrt(2))), using the
    # Abramowitz & Stegun 7.1.26 polynomial (|erf err| <= 1.5e-7).  exp() goes
    # to the EUP; the divide is an approx EUP reciprocal + one Newton step.
    z = x * _INV_SQRT2
    a1, a2, a3, a4, a5 = 0.254829592, -0.284496736, 1.421413741, -1.453152027, 1.061405429
    p = 0.3275911
    az = jnp.abs(z)
    den = 1.0 + p * az
    t = pl.reciprocal(den, approx=True)
    t = t * (2.0 - den * t)                       # one Newton refinement
    poly = ((((a5 * t + a4) * t + a3) * t + a2) * t + a1) * t
    erf_az = 1.0 - poly * jnp.exp(-az * az)
    erf_z = jnp.where(z >= 0, erf_az, -erf_az)
    return 0.5 * x * (1.0 + erf_z)


def _conv_block_kernel(x_ref, w1_ref, b1_ref, w2_ref, b2_ref, wp_ref, bp_ref,
                       out_ref, xg_ref, mid_ref, *, T, K, dilation, pad):
    b_blk = x_ref.shape[0]
    c_in = x_ref.shape[2]
    c_out = out_ref.shape[2]
    tp = xg_ref.shape[1]                           # T + 2*pad
    tail = tp - pad - T
    M = b_blk * T

    # Zero only the per-batch halo rows (cheap).  Done every grid step so
    # correctness does not depend on which core ran step 0.
    if pad > 0:
        xg_ref[:, 0:pad, :] = jnp.zeros((b_blk, pad, c_in), jnp.float32)
        xg_ref[:, pad + T:pad + T + tail, :] = jnp.zeros((b_blk, tail, c_in), jnp.float32)
        mid_ref[:, 0:pad, :] = jnp.zeros((b_blk, pad, c_out), jnp.float32)
        mid_ref[:, pad + T:pad + T + tail, :] = jnp.zeros((b_blk, tail, c_out), jnp.float32)

    # Stage gelu(x) into the zero-haloed scratch (gelu(0)=0, so the halo is
    # consistent with "same" zero padding).
    x2d = x_ref[...].reshape(M, c_in)
    xg_ref[:, pad:pad + T, :] = _gelu_erf(x2d).reshape(b_blk, T, c_in)

    # conv1: fold the K dilated taps AND the batch block into a single MXU
    # matmul: M = B_blk*T rows, contraction = K*c_in.
    lhs1 = jnp.concatenate(
        [xg_ref[:, k * dilation:k * dilation + T, :] for k in range(K)],
        axis=2).reshape(M, K * c_in)
    acc1 = jnp.dot(lhs1, w1_ref[...], preferred_element_type=jnp.float32) + b1_ref[...]

    # Stage gelu(conv1) for conv2's "same" padding.
    mid_ref[:, pad:pad + T, :] = _gelu_erf(acc1).reshape(b_blk, T, c_out)

    # conv2: same tap-folded single matmul.
    lhs2 = jnp.concatenate(
        [mid_ref[:, k * dilation:k * dilation + T, :] for k in range(K)],
        axis=2).reshape(M, K * c_out)
    acc2 = jnp.dot(lhs2, w2_ref[...], preferred_element_type=jnp.float32) + b2_ref[...]

    # Projector residual last (perf review: shortest live range for res);
    # x is re-read from the resident VMEM input block.
    res = jnp.dot(x_ref[...].reshape(M, c_in), wp_ref[...],
                  preferred_element_type=jnp.float32) + bp_ref[...]

    out_ref[...] = (acc2 + res).reshape(b_blk, T, c_out).astype(out_ref.dtype)


def conv_block_pallas(x_nct, w1, b1, w2, b2, wp, bp, *, kernel_size, dilation,
                      batch_block=None):
    """x_nct: (B, C_in, T).  Torch Conv1d weight layouts:
       w1: (C_out, C_in, K), w2: (C_out, C_out, K), wp: (C_out, C_in, 1)."""
    B, c_in, T = x_nct.shape
    c_out, _, K = w1.shape
    assert K == kernel_size
    rf = (kernel_size - 1) * dilation + 1
    pad = rf // 2
    Tp = T + 2 * pad
    f32 = jnp.float32

    # Batch block: fold enough batch elements into the matmul M dim to fill an
    # MXU pass (~256 rows).
    if batch_block is None:
        batch_block = max(1, _MXU_M // T)
    B_blk = max(1, min(B, batch_block))
    B_pad = _round_up(B, B_blk)

    # Activations: NCT -> NTC (channels on lanes), NO channel padding.
    # Follow-up (perf review item 2): do this transpose in-kernel on the XLU.
    x_btc = jnp.transpose(x_nct, (0, 2, 1)).astype(f32)
    if B_pad != B:
        x_btc = jnp.pad(x_btc, ((0, B_pad - B), (0, 0), (0, 0)))

    # Tap-stacked weights: (C_out, C_in, K) -> (K, C_in, C_out) -> (K*C_in, C_out).
    # Row order is tap-major / channel-minor, matching the in-kernel LHS concat.
    w1_s = jnp.transpose(w1, (2, 1, 0)).astype(f32).reshape(K * c_in, c_out)
    w2_s = jnp.transpose(w2, (2, 1, 0)).astype(f32).reshape(K * c_out, c_out)
    wp_s = jnp.transpose(wp[:, :, 0], (1, 0)).astype(f32)          # (C_in, C_out)
    b1_r = b1.astype(f32).reshape(1, c_out)
    b2_r = b2.astype(f32).reshape(1, c_out)
    bp_r = bp.astype(f32).reshape(1, c_out)

    # Explicit VMEM budget sized from the real block + scratch footprint
    # (double-buffered activations/weights + the two persistent scratches).
    act_blocks = [(B_blk, T, c_in), (B_blk, T, c_out)]
    w_blocks = [w1_s.shape, b1_r.shape, w2_s.shape, b2_r.shape, wp_s.shape, bp_r.shape]
    scratches = [(B_blk, Tp, c_in), (B_blk, Tp, c_out)]
    footprint = (2 * sum(_vmem_tile_bytes(s) for s in act_blocks)
                 + 2 * sum(_vmem_tile_bytes(s) for s in w_blocks)
                 + sum(_vmem_tile_bytes(s) for s in scratches))
    vmem_limit = int(min(max(2 * footprint + (4 << 20), 32 << 20), 112 << 20))

    kernel = partial(_conv_block_kernel, T=T, K=K, dilation=dilation, pad=pad)

    out_btc = pl.pallas_call(
        kernel,
        out_shape=jax.ShapeDtypeStruct((B_pad, T, c_out), f32),
        grid_spec=pltpu.PrefetchScalarGridSpec(
            num_scalar_prefetch=0,
            grid=(B_pad // B_blk,),
            in_specs=[
                pl.BlockSpec((B_blk, T, c_in), lambda b: (b, 0, 0)),
                pl.BlockSpec((K * c_in, c_out), lambda b: (0, 0)),
                pl.BlockSpec((1, c_out), lambda b: (0, 0)),
                pl.BlockSpec((K * c_out, c_out), lambda b: (0, 0)),
                pl.BlockSpec((1, c_out), lambda b: (0, 0)),
                pl.BlockSpec((c_in, c_out), lambda b: (0, 0)),
                pl.BlockSpec((1, c_out), lambda b: (0, 0)),
            ],
            out_specs=pl.BlockSpec((B_blk, T, c_out), lambda b: (b, 0, 0)),
            scratch_shapes=[
                pltpu.VMEM((B_blk, Tp, c_in), f32),    # zero-haloed gelu(x)
                pltpu.VMEM((B_blk, Tp, c_out), f32),   # zero-haloed gelu(conv1)
            ],
        ),
        # Batch axis is embarrassingly parallel (v7x shards it across its 2 TCs;
        # harmless on single-core v5e/v6e).
        compiler_params=pltpu.CompilerParams(
            dimension_semantics=("parallel",),
            vmem_limit_bytes=vmem_limit),
    )(x_btc, w1_s, b1_r, w2_s, b2_r, wp_s, bp_r)

    out = out_btc[:B]
    return jnp.transpose(out, (0, 2, 1))                            # back to (B, C_out, T)


def conv_block_ref(x_nct, w1, b1, w2, b2, wp, bp, *, kernel_size, dilation):
    """Pure-JAX reference of the PyTorch forward (exact erf gelu)."""
    def gelu(v):
        return 0.5 * v * (1.0 + jax.lax.erf(v * _INV_SQRT2))

    def samepad(v, w, b):
        rf = (kernel_size - 1) * dilation + 1
        pad = rf // 2
        out = jax.lax.conv_general_dilated(
            v, w, window_strides=(1,), padding=[(pad, pad)],
            rhs_dilation=(dilation,),
            dimension_numbers=("NCH", "OIH", "NCH"))
        out = out + b[None, :, None]
        if rf % 2 == 0:
            out = out[:, :, :-1]                    # torch SamePadConv "remove"
        return out

    residual = jax.lax.conv_general_dilated(
        x_nct, wp, (1,), [(0, 0)],
        dimension_numbers=("NCH", "OIH", "NCH")) + bp[None, :, None]
    h = gelu(x_nct)
    h = samepad(h, w1, b1)
    h = gelu(h)
    h = samepad(h, w2, b2)
    return h + residual


def _run_case(case_idx, B, c_in, c_out, T, K, dil, batch_block=None):
    key = jax.random.fold_in(jax.random.PRNGKey(0), case_idx)
    ks = jax.random.split(key, 7)
    x = jax.random.normal(ks[0], (B, c_in, T), jnp.float32)
    w1 = 0.2 * jax.random.normal(ks[1], (c_out, c_in, K), jnp.float32)
    b1 = 0.1 * jax.random.normal(ks[2], (c_out,), jnp.float32)
    w2 = 0.2 * jax.random.normal(ks[3], (c_out, c_out, K), jnp.float32)
    b2 = 0.1 * jax.random.normal(ks[4], (c_out,), jnp.float32)
    wp = 0.2 * jax.random.normal(ks[5], (c_out, c_in, 1), jnp.float32)
    bp = 0.1 * jax.random.normal(ks[6], (c_out,), jnp.float32)

    out = conv_block_pallas(x, w1, b1, w2, b2, wp, bp,
                            kernel_size=K, dilation=dil, batch_block=batch_block)
    out = jax.block_until_ready(out)

    ref = conv_block_ref(x, w1, b1, w2, b2, wp, bp, kernel_size=K, dilation=dil)
    assert out.shape == (B, c_out, T), out.shape
    err = float(jnp.max(jnp.abs(out - ref)))
    assert jnp.allclose(out, ref, atol=1e-4, rtol=1e-4), \
        f"case {case_idx}: max abs err {err}"


if __name__ == "__main__":
    # ConvBlock(in_channels=4, out_channels=8, kernel_size=3, dilation=2):
    # projector present (in != out); receptive_field=5 (odd), pad=2, remove=0.
    _run_case(0, B=2, c_in=4, c_out=8, T=16, K=3, dil=2)
    # Even receptive field (K=2, d=1 -> rf=2, remove=1) exercises the
    # "drop last sample" path of SamePadConv.
    _run_case(1, B=3, c_in=6, c_out=10, T=24, K=2, dil=1)
    # Multi-step grid with batch padding (B=5 folded into blocks of 2).
    _run_case(2, B=5, c_in=4, c_out=8, T=16, K=3, dil=2, batch_block=2)
    print("KERNEL_OK")
</pallas_src>

<mosaic_0001>
module attributes {stable_mosaic.version = 11 : i64} {
  func.func @_conv_block_kernel(%arg0: i32, %arg1: memref<2x16x4xf32, #tpu.memory_space<vmem>>, %arg2: memref<12x8xf32, #tpu.memory_space<vmem>>, %arg3: memref<1x8xf32, #tpu.memory_space<vmem>>, %arg4: memref<24x8xf32, #tpu.memory_space<vmem>>, %arg5: memref<1x8xf32, #tpu.memory_space<vmem>>, %arg6: memref<4x8xf32, #tpu.memory_space<vmem>>, %arg7: memref<1x8xf32, #tpu.memory_space<vmem>>, %arg8: memref<2x16x8xf32, #tpu.memory_space<vmem>>, %arg9: memref<2x20x4xf32, #tpu.memory_space<vmem>>, %arg10: memref<2x20x8xf32, #tpu.memory_space<vmem>>) attributes {dimension_semantics = [#tpu.dimension_semantics<parallel>], iteration_bounds = array<i64: 1>, scalar_prefetch = 0 : i64, scratch_operands = 2 : i64, tpu.core_type = #tpu.core_type<tc>, window_params = [{transform_indices = @transform_0, window_bounds = array<i64: 2, 16, 4>}, {pipeline_mode = #tpu.pipeline_mode<synchronous>, transform_indices = @transform_1, window_bounds = array<i64: 12, 8>}, {pipeline_mode = #tpu.pipeline_mode<synchronous>, transform_indices = @transform_2, window_bounds = array<i64: 1, 8>}, {pipeline_mode = #tpu.pipeline_mode<synchronous>, transform_indices = @transform_3, window_bounds = array<i64: 24, 8>}, {pipeline_mode = #tpu.pipeline_mode<synchronous>, transform_indices = @transform_4, window_bounds = array<i64: 1, 8>}, {pipeline_mode = #tpu.pipeline_mode<synchronous>, transform_indices = @transform_5, window_bounds = array<i64: 4, 8>}, {pipeline_mode = #tpu.pipeline_mode<synchronous>, transform_indices = @transform_6, window_bounds = array<i64: 1, 8>}, {transform_indices = @transform_7, window_bounds = array<i64: 2, 16, 8>}]} {
    %cst = arith.constant 0.000000e+00 : f32
    %0 = vector.broadcast %cst : f32 to vector<2x2x4xf32>
    %c0 = arith.constant 0 : index
    %c0_0 = arith.constant 0 : index
    %c0_1 = arith.constant 0 : index
    %1 = vector.load %arg9[%c0, %c0_0, %c0_1] : memref<2x20x4xf32, #tpu.memory_space<vmem>>, vector<2x2x4xf32>
    tpu.vector_store %arg9[%c0, %c0_0, %c0_1], %0 {strides = array<i32>} : memref<2x20x4xf32, #tpu.memory_space<vmem>>, vector<2x2x4xf32>,
    %cst_2 = arith.constant 0.000000e+00 : f32
    %2 = vector.broadcast %cst_2 : f32 to vector<2x2x4xf32>
    %c0_3 = arith.constant 0 : index
    %c18 = arith.constant 18 : index
    %c0_4 = arith.constant 0 : index
    %3 = vector.load %arg9[%c0_3, %c18, %c0_4] : memref<2x20x4xf32, #tpu.memory_space<vmem>>, vector<2x2x4xf32>
    tpu.vector_store %arg9[%c0_3, %c18, %c0_4], %2 {strides = array<i32>} : memref<2x20x4xf32, #tpu.memory_space<vmem>>, vector<2x2x4xf32>,
    %cst_5 = arith.constant 0.000000e+00 : f32
    %4 = vector.broadcast %cst_5 : f32 to vector<2x2x8xf32>
    %c0_6 = arith.constant 0 : index
    %c0_7 = arith.constant 0 : index
    %c0_8 = arith.constant 0 : index
    %5 = vector.load %arg10[%c0_6, %c0_7, %c0_8] : memref<2x20x8xf32, #tpu.memory_space<vmem>>, vector<2x2x8xf32>
    tpu.vector_store %arg10[%c0_6, %c0_7, %c0_8], %4 {strides = array<i32>} : memref<2x20x8xf32, #tpu.memory_space<vmem>>, vector<2x2x8xf32>,
    %cst_9 = arith.constant 0.000000e+00 : f32
    %6 = vector.broadcast %cst_9 : f32 to vector<2x2x8xf32>
    %c0_10 = arith.constant 0 : index
    %c18_11 = arith.constant 18 : index
    %c0_12 = arith.constant 0 : index
    %7 = vector.load %arg10[%c0_10, %c18_11, %c0_12] : memref<2x20x8xf32, #tpu.memory_space<vmem>>, vector<2x2x8xf32>
    tpu.vector_store %arg10[%c0_10, %c18_11, %c0_12], %6 {strides = array<i32>} : memref<2x20x8xf32, #tpu.memory_space<vmem>>, vector<2x2x8xf32>,
    %c0_13 = arith.constant 0 : index
    %c0_14 = arith.constant 0 : index
    %c0_15 = arith.constant 0 : index
    %8 = vector.load %arg1[%c0_13, %c0_14, %c0_15] : memref<2x16x4xf32, #tpu.memory_space<vmem>>, vector<2x16x4xf32>
    %9 = vector.shape_cast %8 : vector<2x16x4xf32> to vector<32x4xf32>
    %cst_16 = arith.constant 0.707106769 : f32
    %10 = vector.broadcast %cst_16 : f32 to vector<32x4xf32>
    %11 = arith.mulf %9, %10 : vector<32x4xf32>
    %12 = math.absf %11 : vector<32x4xf32>
    %cst_17 = arith.constant 0.327591091 : f32
    %13 = vector.broadcast %cst_17 : f32 to vector<32x4xf32>
    %14 = arith.mulf %13, %12 : vector<32x4xf32>
    %cst_18 = arith.constant 1.000000e+00 : f32
    %15 = vector.broadcast %cst_18 : f32 to vector<32x4xf32>
    %16 = arith.addf %15, %14 : vector<32x4xf32>
    %17 = tpu.reciprocal %16 {approx = true} : vector<32x4xf32> -> vector<32x4xf32>
    %18 = arith.mulf %16, %17 : vector<32x4xf32>
    %cst_19 = arith.constant 2.000000e+00 : f32
    %19 = vector.broadcast %cst_19 : f32 to vector<32x4xf32>
    %20 = arith.subf %19, %18 : vector<32x4xf32>
    %21 = arith.mulf %17, %20 : vector<32x4xf32>
    %cst_20 = arith.constant 1.06140542 : f32
    %22 = vector.broadcast %cst_20 : f32 to vector<32x4xf32>
    %23 = arith.mulf %22, %21 : vector<32x4xf32>
    %cst_21 = arith.constant -1.45315206 : f32
    %24 = vector.broadcast %cst_21 : f32 to vector<32x4xf32>
    %25 = arith.addf %23, %24 : vector<32x4xf32>
    %26 = arith.mulf %25, %21 : vector<32x4xf32>
    %cst_22 = arith.constant 1.42141378 : f32
    %27 = vector.broadcast %cst_22 : f32 to vector<32x4xf32>
    %28 = arith.addf %26, %27 : vector<32x4xf32>
    %29 = arith.mulf %28, %21 : vector<32x4xf32>
    %cst_23 = arith.constant -0.284496725 : f32
    %30 = vector.broadcast %cst_23 : f32 to vector<32x4xf32>
    %31 = arith.addf %29, %30 : vector<32x4xf32>
    %32 = arith.mulf %31, %21 : vector<32x4xf32>
    %cst_24 = arith.constant 0.254829586 : f32
    %33 = vector.broadcast %cst_24 : f32 to vector<32x4xf32>
    %34 = arith.addf %32, %33 : vector<32x4xf32>
    %35 = arith.mulf %34, %21 : vector<32x4xf32>
    %cst_25 = arith.constant 0.000000e+00 : f32
    %36 = vector.broadcast %cst_25 : f32 to vector<32x4xf32>
    %37 = arith.subf %36, %12 : vector<32x4xf32>
    %38 = arith.mulf %37, %12 : vector<32x4xf32>
    %39 = math.exp %38 : vector<32x4xf32>
    %40 = arith.mulf %35, %39 : vector<32x4xf32>
    %cst_26 = arith.constant 1.000000e+00 : f32
    %41 = vector.broadcast %cst_26 : f32 to vector<32x4xf32>
    %42 = arith.subf %41, %40 : vector<32x4xf32>
    %cst_27 = arith.constant 0.000000e+00 : f32
    %43 = vector.broadcast %cst_27 : f32 to vector<32x4xf32>
    %44 = arith.cmpf oge, %11, %43 : vector<32x4xf32>
    %cst_28 = arith.constant 0.000000e+00 : f32
    %45 = vector.broadcast %cst_28 : f32 to vector<32x4xf32>
    %46 = arith.subf %45, %42 : vector<32x4xf32>
    %47 = arith.select %44, %42, %46 : vector<32x4xi1>, vector<32x4xf32>
    %cst_29 = arith.constant 5.000000e-01 : f32
    %48 = vector.broadcast %cst_29 : f32 to vector<32x4xf32>
    %49 = arith.mulf %48, %9 : vector<32x4xf32>
    %cst_30 = arith.constant 1.000000e+00 : f32
    %50 = vector.broadcast %cst_30 : f32 to vector<32x4xf32>
    %51 = arith.addf %50, %47 : vector<32x4xf32>
    %52 = arith.mulf %49, %51 : vector<32x4xf32>
    %53 = vector.shape_cast %52 : vector<32x4xf32> to vector<2x16x4xf32>
    %c0_31 = arith.constant 0 : index
    %c2 = arith.constant 2 : index
    %c0_32 = arith.constant 0 : index
    %54 = vector.load %arg9[%c0_31, %c2, %c0_32] : memref<2x20x4xf32, #tpu.memory_space<vmem>>, vector<2x16x4xf32>
    tpu.vector_store %arg9[%c0_31, %c2, %c0_32], %53 {strides = array<i32>} : memref<2x20x4xf32, #tpu.memory_space<vmem>>, vector<2x16x4xf32>,
    %c0_33 = arith.constant 0 : index
    %c0_34 = arith.constant 0 : index
    %c0_35 = arith.constant 0 : index
    %55 = vector.load %arg9[%c0_33, %c0_34, %c0_35] : memref<2x20x4xf32, #tpu.memory_space<vmem>>, vector<2x16x4xf32>
    %c0_36 = arith.constant 0 : index
    %c2_37 = arith.constant 2 : index
    %c0_38 = arith.constant 0 : index
    %56 = vector.load %arg9[%c0_36, %c2_37, %c0_38] : memref<2x20x4xf32, #tpu.memory_space<vmem>>, vector<2x16x4xf32>
    %c0_39 = arith.constant 0 : index
    %c4 = arith.constant 4 : index
    %c0_40 = arith.constant 0 : index
    %57 = vector.load %arg9[%c0_39, %c4, %c0_40] : memref<2x20x4xf32, #tpu.memory_space<vmem>>, vector<2x16x4xf32>
    %58 = tpu.concatenate %55, %56, %57 in 2 : vector<2x16x4xf32>, vector<2x16x4xf32>, vector<2x16x4xf32> -> vector<2x16x12xf32>
    %59 = vector.shape_cast %58 : vector<2x16x12xf32> to vector<32x12xf32>
    %c0_41 = arith.constant 0 : index
    %c0_42 = arith.constant 0 : index
    %60 = vector.load %arg2[%c0_41, %c0_42] : memref<12x8xf32, #tpu.memory_space<vmem>>, vector<12x8xf32>
    %cst_43 = arith.constant dense<0.000000e+00> : vector<32x8xf32>
    %61 = tpu.matmul %59, %60, %cst_43 {dimension_numbers = #tpu.dot_dimension_numbers<[1], [0], [0], [1], [0, 0, 1, 1], [], []>} : vector<32x12xf32>, vector<12x8xf32>, vector<32x8xf32> -> vector<32x8xf32>
    %c0_44 = arith.constant 0 : index
    %c0_45 = arith.constant 0 : index
    %62 = vector.load %arg3[%c0_44, %c0_45] : memref<1x8xf32, #tpu.memory_space<vmem>>, vector<1x8xf32>
    %63 = vector.broadcast %62 : vector<1x8xf32> to vector<32x8xf32>
    %64 = arith.addf %61, %63 : vector<32x8xf32>
    %cst_46 = arith.constant 0.707106769 : f32
    %65 = vector.broadcast %cst_46 : f32 to vector<32x8xf32>
    %66 = arith.mulf %64, %65 : vector<32x8xf32>
    %67 = math.absf %66 : vector<32x8xf32>
    %cst_47 = arith.constant 0.327591091 : f32
    %68 = vector.broadcast %cst_47 : f32 to vector<32x8xf32>
    %69 = arith.mulf %68, %67 : vector<32x8xf32>
    %cst_48 = arith.constant 1.000000e+00 : f32
    %70 = vector.broadcast %cst_48 : f32 to vector<32x8xf32>
    %71 = arith.addf %70, %69 : vector<32x8xf32>
    %72 = tpu.reciprocal %71 {approx = true} : vector<32x8xf32> -> vector<32x8xf32>
    %73 = arith.mulf %71, %72 : vector<32x8xf32>
    %cst_49 = arith.constant 2.000000e+00 : f32
    %74 = vector.broadcast %cst_49 : f32 to vector<32x8xf32>
    %75 = arith.subf %74, %73 : vector<32x8xf32>
    %76 = arith.mulf %72, %75 : vector<32x8xf32>
    %cst_50 = arith.constant 1.06140542 : f32
    %77 = vector.broadcast %cst_50 : f32 to vector<32x8xf32>
    %78 = arith.mulf %77, %76 : vector<32x8xf32>
    %cst_51 = arith.constant -1.45315206 : f32
    %79 = vector.broadcast %cst_51 : f32 to vector<32x8xf32>
    %80 = arith.addf %78, %79 : vector<32x8xf32>
    %81 = arith.mulf %80, %76 : vector<32x8xf32>
    %cst_52 = arith.constant 1.42141378 : f32
    %82 = vector.broadcast %cst_52 : f32 to vector<32x8xf32>
    %83 = arith.addf %81, %82 : vector<32x8xf32>
    %84 = arith.mulf %83, %76 : vector<32x8xf32>
    %cst_53 = arith.constant -0.284496725 : f32
    %85 = vector.broadcast %cst_53 : f32 to vector<32x8xf32>
    %86 = arith.addf %84, %85 : vector<32x8xf32>
    %87 = arith.mulf %86, %76 : vector<32x8xf32>
    %cst_54 = arith.constant 0.254829586 : f32
    %88 = vector.broadcast %cst_54 : f32 to vector<32x8xf32>
    %89 = arith.addf %87, %88 : vector<32x8xf32>
    %90 = arith.mulf %89, %76 : vector<32x8xf32>
    %cst_55 = arith.constant 0.000000e+00 : f32
    %91 = vector.broadcast %cst_55 : f32 to vector<32x8xf32>
    %92 = arith.subf %91, %67 : vector<32x8xf32>
    %93 = arith.mulf %92, %67 : vector<32x8xf32>
    %94 = math.exp %93 : vector<32x8xf32>
    %95 = arith.mulf %90, %94 : vector<32x8xf32>
    %cst_56 = arith.constant 1.000000e+00 : f32
    %96 = vector.broadcast %cst_56 : f32 to vector<32x8xf32>
    %97 = arith.subf %96, %95 : vector<32x8xf32>
    %cst_57 = arith.constant 0.000000e+00 : f32
    %98 = vector.broadcast %cst_57 : f32 to vector<32x8xf32>
    %99 = arith.cmpf oge, %66, %98 : vector<32x8xf32>
    %cst_58 = arith.constant 0.000000e+00 : f32
    %100 = vector.broadcast %cst_58 : f32 to vector<32x8xf32>
    %101 = arith.subf %100, %97 : vector<32x8xf32>
    %102 = arith.select %99, %97, %101 : vector<32x8xi1>, vector<32x8xf32>
    %cst_59 = arith.constant 5.000000e-01 : f32
    %103 = vector.broadcast %cst_59 : f32 to vector<32x8xf32>
    %104 = arith.mulf %103, %64 : vector<32x8xf32>
    %cst_60 = arith.constant 1.000000e+00 : f32
    %105 = vector.broadcast %cst_60 : f32 to vector<32x8xf32>
    %106 = arith.addf %105, %102 : vector<32x8xf32>
    %107 = arith.mulf %104, %106 : vector<32x8xf32>
    %108 = vector.shape_cast %107 : vector<32x8xf32> to vector<2x16x8xf32>
    %c0_61 = arith.constant 0 : index
    %c2_62 = arith.constant 2 : index
    %c0_63 = arith.constant 0 : index
    %109 = vector.load %arg10[%c0_61, %c2_62, %c0_63] : memref<2x20x8xf32, #tpu.memory_space<vmem>>, vector<2x16x8xf32>
    tpu.vector_store %arg10[%c0_61, %c2_62, %c0_63], %108 {strides = array<i32>} : memref<2x20x8xf32, #tpu.memory_space<vmem>>, vector<2x16x8xf32>,
    %c0_64 = arith.constant 0 : index
    %c0_65 = arith.constant 0 : index
    %c0_66 = arith.constant 0 : index
    %110 = vector.load %arg10[%c0_64, %c0_65, %c0_66] : memref<2x20x8xf32, #tpu.memory_space<vmem>>, vector<2x16x8xf32>
    %c0_67 = arith.constant 0 : index
    %c2_68 = arith.constant 2 : index
    %c0_69 = arith.constant 0 : index
    %111 = vector.load %arg10[%c0_67, %c2_68, %c0_69] : memref<2x20x8xf32, #tpu.memory_space<vmem>>, vector<2x16x8xf32>
    %c0_70 = arith.constant 0 : index
    %c4_71 = arith.constant 4 : index
    %c0_72 = arith.constant 0 : index
    %112 = vector.load %arg10[%c0_70, %c4_71, %c0_72] : memref<2x20x8xf32, #tpu.memory_space<vmem>>, vector<2x16x8xf32>
    %113 = tpu.concatenate %110, %111, %112 in 2 : vector<2x16x8xf32>, vector<2x16x8xf32>, vector<2x16x8xf32> -> vector<2x16x24xf32>
    %114 = vector.shape_cast %113 : vector<2x16x24xf32> to vector<32x24xf32>
    %c0_73 = arith.constant 0 : index
    %c0_74 = arith.constant 0 : index
    %115 = vector.load %arg4[%c0_73, %c0_74] : memref<24x8xf32, #tpu.memory_space<vmem>>, vector<24x8xf32>
    %cst_75 = arith.constant dense<0.000000e+00> : vector<32x8xf32>
    %116 = tpu.matmul %114, %115, %cst_75 {dimension_numbers = #tpu.dot_dimension_numbers<[1], [0], [0], [1], [0, 0, 1, 1], [], []>} : vector<32x24xf32>, vector<24x8xf32>, vector<32x8xf32> -> vector<32x8xf32>
    %c0_76 = arith.constant 0 : index
    %c0_77 = arith.constant 0 : index
    %117 = vector.load %arg5[%c0_76, %c0_77] : memref<1x8xf32, #tpu.memory_space<vmem>>, vector<1x8xf32>
    %118 = vector.broadcast %117 : vector<1x8xf32> to vector<32x8xf32>
    %119 = arith.addf %116, %118 : vector<32x8xf32>
    %c0_78 = arith.constant 0 : index
    %c0_79 = arith.constant 0 : index
    %c0_80 = arith.constant 0 : index
    %120 = vector.load %arg1[%c0_78, %c0_79, %c0_80] : memref<2x16x4xf32, #tpu.memory_space<vmem>>, vector<2x16x4xf32>
    %121 = vector.shape_cast %120 : vector<2x16x4xf32> to vector<32x4xf32>
    %c0_81 = arith.constant 0 : index
    %c0_82 = arith.constant 0 : index
    %122 = vector.load %arg6[%c0_81, %c0_82] : memref<4x8xf32, #tpu.memory_space<vmem>>, vector<4x8xf32>
    %cst_83 = arith.constant dense<0.000000e+00> : vector<32x8xf32>
    %123 = tpu.matmul %121, %122, %cst_83 {dimension_numbers = #tpu.dot_dimension_numbers<[1], [0], [0], [1], [0, 0, 1, 1], [], []>} : vector<32x4xf32>, vector<4x8xf32>, vector<32x8xf32> -> vector<32x8xf32>
    %c0_84 = arith.constant 0 : index
    %c0_85 = arith.constant 0 : index
    %124 = vector.load %arg7[%c0_84, %c0_85] : memref<1x8xf32, #tpu.memory_space<vmem>>, vector<1x8xf32>
    %125 = vector.broadcast %124 : vector<1x8xf32> to vector<32x8xf32>
    %126 = arith.addf %123, %125 : vector<32x8xf32>
    %127 = arith.addf %119, %126 : vector<32x8xf32>
    %128 = vector.shape_cast %127 : vector<32x8xf32> to vector<2x16x8xf32>
    %c0_86 = arith.constant 0 : index
    %c0_87 = arith.constant 0 : index
    %c0_88 = arith.constant 0 : index
    %129 = vector.load %arg8[%c0_86, %c0_87, %c0_88] : memref<2x16x8xf32, #tpu.memory_space<vmem>>, vector<2x16x8xf32>
    tpu.vector_store %arg8[%c0_86, %c0_87, %c0_88], %128 {strides = array<i32>} : memref<2x16x8xf32, #tpu.memory_space<vmem>>, vector<2x16x8xf32>,
    return
  }
  func.func @transform_0(%arg0: i32) -> (i32, i32, i32) {
    %c0_i32 = arith.constant 0 : i32
    %c0_i32_0 = arith.constant 0 : i32
    %c0_i32_1 = arith.constant 0 : i32
    return %arg0, %c0_i32, %c0_i32_0 : i32, i32, i32
  }
  func.func @transform_1(%arg0: i32) -> (i32, i32) {
    %c0_i32 = arith.constant 0 : i32
    %c0_i32_0 = arith.constant 0 : i32
    %c0_i32_1 = arith.constant 0 : i32
    return %c0_i32, %c0_i32_0 : i32, i32
  }
  func.func @transform_2(%arg0: i32) -> (i32, i32) {
    %c0_i32 = arith.constant 0 : i32
    %c0_i32_0 = arith.constant 0 : i32
    %c0_i32_1 = arith.constant 0 : i32
    return %c0_i32, %c0_i32_0 : i32, i32
  }
  func.func @transform_3(%arg0: i32) -> (i32, i32) {
    %c0_i32 = arith.constant 0 : i32
    %c0_i32_0 = arith.constant 0 : i32
    %c0_i32_1 = arith.constant 0 : i32
    return %c0_i32, %c0_i32_0 : i32, i32
  }
  func.func @transform_4(%arg0: i32) -> (i32, i32) {
    %c0_i32 = arith.constant 0 : i32
    %c0_i32_0 = arith.constant 0 : i32
    %c0_i32_1 = arith.constant 0 : i32
    return %c0_i32, %c0_i32_0 : i32, i32
  }
  func.func @transform_5(%arg0: i32) -> (i32, i32) {
    %c0_i32 = arith.constant 0 : i32
    %c0_i32_0 = arith.constant 0 : i32
    %c0_i32_1 = arith.constant 0 : i32
    return %c0_i32, %c0_i32_0 : i32, i32
  }
  func.func @transform_6(%arg0: i32) -> (i32, i32) {
    %c0_i32 = arith.constant 0 : i32
    %c0_i32_0 = arith.constant 0 : i32
    %c0_i32_1 = arith.constant 0 : i32
    return %c0_i32, %c0_i32_0 : i32, i32
  }
  func.func @transform_7(%arg0: i32) -> (i32, i32, i32) {
    %c0_i32 = arith.constant 0 : i32
    %c0_i32_0 = arith.constant 0 : i32
    %c0_i32_1 = arith.constant 0 : i32
    return %arg0, %c0_i32, %c0_i32_0 : i32, i32, i32
  }
}

</mosaic_0001>

<bundles_post_ra>
// kernel: tpu_custom_call.1
= control target key start
LH: loop header
LB: loop body
LE: loop exit
PB: predicated region body
PF: predicated region fallthrough
CT: control target
= control target key end

     0   :  { %vm26_vm0 = vcmask 25600   ;;  %v611_v54 = vmov 0.0   ;;  %vm156_vm4 = vcmask 31744   ;;  %s613_s9 = smov 8   ;;  %vm233_vm6 = vcmask 1043456   ;;  %s833_s0 = inlined_call_operand.vmem [shape: f32[2,16,4], index: 0, kind: input, shape index: {}]   ;;  %s834_s2 = inlined_call_operand.vmem [shape: f32[1,8], index: 2, kind: input, shape index: {}]   ;;  %s835_s1 = inlined_call_operand.vmem [shape: f32[12,8], index: 1, kind: input, shape index: {}]   ;;  %s836_s6 = inlined_call_operand.vmem [shape: f32[1,8], index: 6, kind: input, shape index: {}]   ;;  %s837_s5 = inlined_call_operand.vmem [shape: f32[4,8], index: 5, kind: input, shape index: {}]   ;;  %s838_s3 = inlined_call_operand.vmem [shape: f32[24,8], index: 3, kind: input, shape index: {}]   ;;  %s839_s4 = inlined_call_operand.vmem [shape: f32[1,8], index: 4, kind: input, shape index: {}]   ;;  %s840_s7 = inlined_call_operand.vmem [shape: f32[2,16,8], index: 7, kind: output, shape index: {}]  }
   0x1   :  { %v658_v0 = vld [vmem:[%s833_s0 + $0x8] sm:$0xff]  ;;  %v663_v1 = vld [vmem:[%s833_s0] sm:$0xff]  ;;  %v668_v2 = vld [vmem:[%s833_s0 + $0x18] sm:$0xff]  ;;  %29 = vst.msk [vmem:[#allocation2 + $0x12] sm:$0x3] %vm26_vm0, %v611_v54  ;;  %vm209_vm7 = vcmask 64512  }
   0x2   :  { %v671_v3 = vmul.f32 0.70710677, %v658_v0  ;;  %v674_v4 = vmul.f32 0.70710677, %v663_v1  ;;  %v677_v5 = vmul.f32 0.70710677, %v668_v2 }
   0x3   :  { %v682_v6 = vld [vmem:[%s833_s0 + $0x10] sm:$0xff]  ;;  %27 = vst.msk [vmem:[#allocation2] sm:$0x3] %vm26_vm0, %v611_v54  ;;  %s612_s0 = smov 4   ;;  %vm220_vm8 = vcmask 97280   ;;  %vm31_vm9 = vcmask 58368  }
   0x4   :  { %v45_v7 = vand.u32 2147483647, %v671_v3  ;;  %v44_v8 = vand.u32 2147483647, %v674_v4  ;;  %v47_v9 = vand.u32 2147483647, %v677_v5 }
   0x5   :  { %v688_v10 = vmul.f32 0.70710677, %v682_v6  ;;  %28 = vst.msk [vmem:[#allocation2 + $0x18] sm:$0x3] %vm26_vm0, %v611_v54  ;;  %vm133_vm1 = vcmp.ge.f32.partialorder %v671_v3, 0.0  ;;  %vm132_vm2 = vcmp.ge.f32.partialorder %v674_v4, 0.0 }
   0x6   :  { %v49_v11 = vmul.f32 0.3275911, %v45_v7  ;;  %v48_v12 = vmul.f32 0.3275911, %v44_v8  ;;  %v51_v13 = vmul.f32 0.3275911, %v47_v9 }
   0x7   :  { %v46_v14 = vand.u32 2147483647, %v688_v10  ;;  %v109_v23 = vsub.f32 0.0, %v45_v7  ;;  %v108_v26 = vsub.f32 0.0, %v44_v8  ;;  %v111_v38 = vsub.f32 0.0, %v47_v9 }
   0x8   :  { %v53_v15 = vadd.f32 1.0, %v49_v11  ;;  %v52_v16 = vadd.f32 1.0, %v48_v12  ;;  %v55_v18 = vadd.f32 1.0, %v51_v13  ;;  %30 = vst.msk [vmem:[#allocation2 + $0x2a] sm:$0x3] %vm26_vm0, %v611_v54  ;;  %vm135_vm3 = vcmp.ge.f32.partialorder %v677_v5, 0.0 }
   0x9   :  { %v50_v17 = vmul.f32 0.3275911, %v46_v14  ;;  %v113_v32 = vmul.f32 %v109_v23, %v45_v7  ;;  %v112_v36 = vmul.f32 %v108_v26, %v44_v8  ;;  %v110_v43 = vsub.f32 0.0, %v46_v14  ;;  %34 = vst.msk [vmem:[#allocation3 + $0x12] sm:$0x3] %vm31_vm9, %v611_v54 }
   0xa   :  { %579 = vrcp.f32 %v53_v15  ;;  %v115_v50 = vmul.f32 %v111_v38, %v47_v9  ;;  %vm134_vm5 = vcmp.ge.f32.partialorder %v688_v10, 0.0  ;;  %32 = vst.msk [vmem:[#allocation3] sm:$0x3] %vm31_vm9, %v611_v54  ;;  %vm434_vm14 = vcmask 130048  }
   0xb   :  { %581 = vrcp.f32 %v52_v16  ;;  %v54_v19 = vadd.f32 1.0, %v50_v17  ;;  %v118_v44 = vmul.f32 1.442695, %v113_v32  ;;  %v116_v48 = vmul.f32 1.442695, %v112_v36 }
   0xc   :  { %583 = vrcp.f32 %v55_v18  ;;  %v114_v56 = vmul.f32 %v110_v43, %v46_v14  ;;  %v122_v62 = vmul.f32 1.442695, %v115_v50  ;;  %33 = vst.msk [vmem:[#allocation3 + $0x18] sm:$0x3] %vm31_vm9, %v611_v54  ;;  %vm446_vm15 = vcmask 195584  }
   0xd   :  { %585 = vrcp.f32 %v54_v19  ;;  %35 = vst.msk [vmem:[#allocation3 + $0x2a] sm:$0x3] %vm31_vm9, %v611_v54 }
   0xe   :  { %587 = vpow2.f32 %v118_v44  ;;  %v120_v9 = vmul.f32 1.442695, %v114_v56  ;;  %v144_v44 = vmul.f32 0.5, %v663_v1 }
   0xf   :  { %589 = vpow2.f32 %v116_v48 }
  0x10   :  { %v580_v20 = vpop.eup %579  ;;  %591 = vpow2.f32 %v122_v62 }
  0x11   :  { %v582_v21 = vpop.eup %581  ;;  %v61_v22 = vmul.f32 %v580_v20, %v53_v15  ;;  %593 = vpow2.f32 %v120_v9  ;;  %v215_v9 = vld [vmem:[%s835_s1 + $0x8] sm:$0xf] }
  0x12   :  { %v60_v24 = vmul.f32 %v582_v21, %v52_v16  ;;  %v584_v27 = vpop.eup %583  ;;  %553 = vmatpush.msk.msra.mxu0 %vm233_vm6, %v215_v9  ;;  %567 = vmatpush.msk.msra.mxu1 %vm233_vm6, %v215_v9 }
  0x13   :  { %v65_v25 = vsub.f32 2.0, %v61_v22  ;;  %v586_v29 = vpop.eup %585  ;;  %v63_v31 = vmul.f32 %v584_v27, %v55_v18 }
  0x14   :  { %v64_v28 = vsub.f32 2.0, %v60_v24  ;;  %v62_v34 = vmul.f32 %v586_v29, %v54_v19  ;;  %v588_v19 = vpop.eup %587 }
  0x15   :  { %v69_v30 = vmul.f32 %v580_v20, %v65_v25  ;;  %v67_v37 = vsub.f32 2.0, %v63_v31  ;;  %v590_v22 = vpop.eup %589 }
  0x16   :  { %v68_v33 = vmul.f32 %v582_v21, %v64_v28  ;;  %v66_v40 = vsub.f32 2.0, %v62_v34 }
  0x17   :  { %v73_v35 = vmul.f32 1.0614054, %v69_v30  ;;  %v71_v42 = vmul.f32 %v584_v27, %v67_v37 }
  0x18   :  { %v72_v39 = vmul.f32 1.0614054, %v68_v33  ;;  %v70_v46 = vmul.f32 %v586_v29, %v66_v40  ;;  %v592_v29 = vpop.eup %591 }
  0x19   :  { %v77_v41 = vadd.f32 -1.4531521, %v73_v35  ;;  %v75_v49 = vmul.f32 1.0614054, %v71_v42  ;;  %v594_v34 = vpop.eup %593 }
  0x1a   :  { %v76_v45 = vadd.f32 -1.4531521, %v72_v39  ;;  %v74_v52 = vmul.f32 1.0614054, %v70_v46 }
  0x1b   :  { %v81_v47 = vmul.f32 %v77_v41, %v69_v30  ;;  %v79_v55 = vadd.f32 -1.4531521, %v75_v49  ;;  %v147_v49 = vmul.f32 0.5, %v668_v2 }
  0x1c   :  { %v80_v51 = vmul.f32 %v76_v45, %v68_v33  ;;  %v78_v58 = vadd.f32 -1.4531521, %v74_v52 }
  0x1d   :  { %v85_v53 = vadd.f32 1.4214138, %v81_v47  ;;  %v83_v60 = vmul.f32 %v79_v55, %v71_v42 }
  0x1e   :  { %v84_v57 = vadd.f32 1.4214138, %v80_v51  ;;  %v82_v63 = vmul.f32 %v78_v58, %v70_v46 }
  0x1f   :  { %v89_v59 = vmul.f32 %v85_v53, %v69_v30  ;;  %v87_v8 = vadd.f32 1.4214138, %v83_v60  ;;  %v146_v53 = vmul.f32 0.5, %v682_v6 }
  0x20   :  { %v88_v61 = vmul.f32 %v84_v57, %v68_v33  ;;  %v86_v12 = vadd.f32 1.4214138, %v82_v63 }
  0x21   :  { %v93_v7 = vadd.f32 -0.28449672, %v89_v59  ;;  %v91_v14 = vmul.f32 %v87_v8, %v71_v42 }
  0x22   :  { %v92_v11 = vadd.f32 -0.28449672, %v88_v61  ;;  %v90_v16 = vmul.f32 %v86_v12, %v70_v46 }
  0x23   :  { %v97_v13 = vmul.f32 %v93_v7, %v69_v30  ;;  %v95_v18 = vadd.f32 -0.28449672, %v91_v14 }
  0x24   :  { %v96_v15 = vmul.f32 %v92_v11, %v68_v33  ;;  %v94_v21 = vadd.f32 -0.28449672, %v90_v16  ;;  %v214_v11 = vld [vmem:[%s835_s1] sm:$0xff] }
  0x25   :  { %v101_v17 = vadd.f32 0.2548296, %v97_v13  ;;  %v99_v24 = vmul.f32 %v95_v18, %v71_v42  ;;  %252 = vmatpush.msra.mxu0 %v214_v11  ;;  %568 = vmatpush.msra.mxu1 %v214_v11 }
  0x26   :  { %v100_v20 = vadd.f32 0.2548296, %v96_v15  ;;  %v98_v26 = vmul.f32 %v94_v21, %v70_v46 }
  0x27   :  { %v105_v23 = vmul.f32 %v101_v17, %v69_v30  ;;  %v103_v28 = vadd.f32 0.2548296, %v99_v24  ;;  %v145_v30 = vmul.f32 0.5, %v658_v0 }
  0x28   :  { %v104_v25 = vmul.f32 %v100_v20, %v68_v33  ;;  %v102_v32 = vadd.f32 0.2548296, %v98_v26 }
  0x29   :  { %v125_v27 = vmul.f32 %v588_v19, %v105_v23  ;;  %v107_v36 = vmul.f32 %v103_v28, %v71_v42 }
  0x2a   :  { %v124_v31 = vmul.f32 %v590_v22, %v104_v25  ;;  %v106_v38 = vmul.f32 %v102_v32, %v70_v46 }
  0x2b   :  { %v129_v35 = vsub.f32 1.0, %v125_v27  ;;  %v127_v40 = vmul.f32 %v592_v29, %v107_v36 }
  0x2c   :  { %v128_v37 = vsub.f32 1.0, %v124_v31  ;;  %v126_v41 = vmul.f32 %v594_v34, %v106_v38  ;;  %v576_v34 = vld [vmem:[%s834_s2] ss:$0 sm:$0xff]  ;;  %s614_s2 = smov 16  }
  0x2d   :  { %v137_v39 = vsub.f32 0.0, %v129_v35  ;;  %v131_v45 = vsub.f32 1.0, %v127_v40 }
  0x2e   :  { %v136_v33 = vsub.f32 0.0, %v128_v37  ;;  %v130_v42 = vsub.f32 1.0, %v126_v41 }
  0x2f   :  { %v141_v43 = vsel %vm133_vm1, %v129_v35, %v137_v39  ;;  %v139_v46 = vsub.f32 0.0, %v131_v45 }
  0x30   :  { %v149_v47 = vadd.f32 1.0, %v141_v43  ;;  %v140_v48 = vsel %vm132_vm2, %v128_v37, %v136_v33  ;;  %v138_v50 = vsub.f32 0.0, %v130_v42 }
  0x31   :  { %v148_v3 = vadd.f32 1.0, %v140_v48  ;;  %v143_v52 = vsel %vm135_vm3, %v131_v45, %v139_v46 }
  0x32   :  { %v153_v4 = vmul.f32 %v149_v47, %v145_v30  ;;  %v151_v55 = vadd.f32 1.0, %v143_v52  ;;  %v142_v56 = vsel %vm134_vm5, %v130_v42, %v138_v50 }
  0x33   :  { %v152_v51 = vmul.f32 %v148_v3, %v144_v44  ;;  %v150_v5 = vadd.f32 1.0, %v142_v56 }
  0x34   :  { %158 = vst.msk [vmem:[#allocation2 + $0xa] sm:$0xff] %vm156_vm4, %v153_v4  ;;  %v155_v57 = vmul.f32 %v151_v55, %v147_v49 }
  0x35   :  { %157 = vst.msk [vmem:[#allocation2 + $0x2] sm:$0xff] %vm156_vm4, %v152_v51  ;;  %v154_v58 = vmul.f32 %v150_v5, %v146_v53 }
  0x36   :  { %160 = vst.msk [vmem:[#allocation2 + $0x22] sm:$0xff] %vm156_vm4, %v155_v57 }
  0x37   :  { %159 = vst.msk [vmem:[#allocation2 + $0x1a] sm:$0xff] %vm156_vm4, %v154_v58 }
  0x3b   :  { %v166_v10 = vld [vmem:[#allocation2 + $0xa] sm:$0xff] }
  0x3c   :  { %179 = vrot.lane.b32.xlu1 %v166_v10, %s612_s0  ;;  %v165_v59 = vld [vmem:[#allocation2 + $0x2] sm:$0xff]  ;;  %v170_v61 = vld [vmem:[#allocation2 + $0xc] sm:$0xff] }
  0x3d   :  { %177 = vrot.lane.b32.xlu0 %v165_v59, %s612_s0  ;;  %v169_v62 = vld [vmem:[#allocation2 + $0x4] sm:$0xff] }
  0x3e   :  { %v167_v60 = vld [vmem:[#allocation2 + $0x1a] sm:$0xff]  ;;  %v168_v63 = vld [vmem:[#allocation2 + $0x22] sm:$0xff] }
  0x3f   :  { %181 = vrot.lane.b32.xlu2 %v167_v60, %s612_s0  ;;  %v172_v7 = vld [vmem:[#allocation2 + $0x24] sm:$0xff]  ;;  %v171_v8 = vld [vmem:[#allocation2 + $0x1c] sm:$0xff] }
  0x40   :  { %v161_v15 = vld [vmem:[#allocation2] sm:$0xff]  ;;  %v162_v22 = vld [vmem:[#allocation2 + $0x8] sm:$0xff]  ;;  %v163_v27 = vld [vmem:[#allocation2 + $0x18] sm:$0xff] }
  0x41   :  { %v164_v21 = vld [vmem:[#allocation2 + $0x20] sm:$0xff] }
  0x44   :  { %195 = vrot.lane.b32.xlu1 %v170_v61, %s613_s9 }
  0x45   :  { %193 = vrot.lane.b32.xlu0 %v169_v62, %s613_s9 }
  0x47   :  { %183 = vrot.lane.b32.xlu2 %v168_v63, %s612_s0 }
  0x4c   :  { %199 = vrot.lane.b32.xlu1 %v172_v7, %s613_s9 }
  0x4d   :  { %197 = vrot.lane.b32.xlu0 %v171_v8, %s613_s9 }
  0x99   :  { %v182_v14 = vpop.permute.xlu2 %181 }
  0x9a   :  { %v207_v29 = vsel %vm156_vm4, %v163_v27, %v182_v14 }
  0xa1   :  { %v184_v20 = vpop.permute.xlu2 %183 }
  0xa2   :  { %v208_v23 = vsel %vm156_vm4, %v164_v21, %v184_v20 }
  0xae   :  { %v180_v12 = vpop.permute.xlu1 %179 }
  0xaf   :  { %v178_v13 = vpop.permute.xlu0 %177  ;;  %v206_v24 = vsel %vm156_vm4, %v162_v22, %v180_v12 }
  0xb0   :  { %v205_v17 = vsel %vm156_vm4, %v161_v15, %v178_v13 }
  0xb6   :  { %v196_v16 = vpop.permute.xlu1 %195 }
  0xb7   :  { %v194_v18 = vpop.permute.xlu0 %193  ;;  %v211_v28 = vsel %vm209_vm7, %v206_v24, %v196_v16 }
  0xb8   :  { %v210_v19 = vsel %vm209_vm7, %v205_v17, %v194_v18 }
  0xb9   :  { %554 = vmatmul.msk.f32.vlgmr.msra.gmra.mxu0 %vm220_vm8, %v210_v19 }
  0xbe   :  { %v200_v25 = vpop.permute.xlu1 %199 }
  0xbf   :  { %v213_v26 = vsel %vm209_vm7, %v208_v23, %v200_v25  ;;  %v198_v31 = vpop.permute.xlu0 %197 }
  0xc0   :  { %557 = vmatmul.msk.f32.vlgmr.msra.gmra.mxu1 %vm220_vm8, %v213_v26  ;;  %v212_v32 = vsel %vm209_vm7, %v207_v29, %v198_v31 }
  0xc1   :  { %555 = vmatmul.msk.f32.gmra.mxu0 %vm220_vm8, %v211_v28 }
  0xc9   :  { %556 = vmatmul.msk.f32.gmra.mxu0 %vm220_vm8, %v212_v32 }
 0x136   :  { %v254_v35 = vpop.f32.mrf.mxu0 }
 0x137   :  { %v734_v36 = vadd.f32 %v576_v34, %v254_v35 }
 0x139   :  { %v737_v37 = vmul.f32 0.70710677, %v734_v36 }
 0x13b   :  { %v270_v38 = vand.u32 2147483647, %v737_v37  ;;  %vm358_vm10 = vcmp.ge.f32.partialorder %v737_v37, 0.0 }
 0x13d   :  { %v274_v39 = vmul.f32 0.3275911, %v270_v38  ;;  %v263_v40 = vpop.f32.mrf.mxu1  ;;  %v334_v57 = vsub.f32 0.0, %v270_v38 }
 0x13e   :  { %v257_v30 = vpop.f32.mrf.mxu0  ;;  %v740_v33 = vadd.f32 %v576_v34, %v263_v40 }
 0x13f   :  { %v278_v41 = vadd.f32 1.0, %v274_v39  ;;  %v742_v43 = vadd.f32 %v576_v34, %v257_v30  ;;  %v338_v8 = vmul.f32 %v334_v57, %v270_v38 }
 0x140   :  { %v745_v44 = vmul.f32 0.70710677, %v740_v33 }
 0x141   :  { %595 = vrcp.f32 %v278_v41  ;;  %v748_v45 = vmul.f32 0.70710677, %v742_v43  ;;  %v342_v17 = vmul.f32 1.442695, %v338_v8 }
 0x142   :  { %v273_v47 = vand.u32 2147483647, %v745_v44  ;;  %vm361_vm11 = vcmp.ge.f32.partialorder %v745_v44, 0.0 }
 0x143   :  { %v271_v48 = vand.u32 2147483647, %v748_v45  ;;  %vm359_vm12 = vcmp.ge.f32.partialorder %v748_v45, 0.0 }
 0x144   :  { %v277_v42 = vmul.f32 0.3275911, %v273_v47  ;;  %v337_v16 = vsub.f32 0.0, %v273_v47 }
 0x145   :  { %v275_v3 = vmul.f32 0.3275911, %v271_v48  ;;  %v335_v18 = vsub.f32 0.0, %v271_v48 }
 0x146   :  { %v281_v46 = vadd.f32 1.0, %v277_v42  ;;  %v260_v4 = vpop.f32.mrf.mxu0  ;;  %v341_v25 = vmul.f32 %v337_v16, %v273_v47  ;;  %v370_v16 = vmul.f32 0.5, %v734_v36 }
 0x147   :  { %v596_v49 = vpop.eup %595  ;;  %v279_v50 = vadd.f32 1.0, %v275_v3  ;;  %v752_v51 = vadd.f32 %v576_v34, %v260_v4  ;;  %v339_v27 = vmul.f32 %v335_v18, %v271_v48 }
 0x148   :  { %v286_v52 = vmul.f32 %v596_v49, %v278_v41  ;;  %597 = vrcp.f32 %v281_v46  ;;  %v348_v39 = vmul.f32 1.442695, %v341_v25 }
 0x149   :  { %599 = vrcp.f32 %v279_v50  ;;  %v755_v53 = vmul.f32 0.70710677, %v752_v51  ;;  %v344_v30 = vmul.f32 1.442695, %v339_v27 }
 0x14a   :  { %v290_v55 = vsub.f32 2.0, %v286_v52 }
 0x14b   :  { %v272_v56 = vand.u32 2147483647, %v755_v53  ;;  %vm360_vm13 = vcmp.ge.f32.partialorder %v755_v53, 0.0 }
 0x14c   :  { %v294_v5 = vmul.f32 %v596_v49, %v290_v55 }
 0x14d   :  { %v276_v58 = vmul.f32 0.3275911, %v272_v56  ;;  %v336_v42 = vsub.f32 0.0, %v272_v56 }
 0x14e   :  { %v598_v10 = vpop.eup %597  ;;  %v298_v59 = vmul.f32 1.0614054, %v294_v5 }
 0x14f   :  { %v600_v60 = vpop.eup %599  ;;  %v289_v61 = vmul.f32 %v598_v10, %v281_v46  ;;  %v280_v62 = vadd.f32 1.0, %v276_v58  ;;  %v340_v57 = vmul.f32 %v336_v42, %v272_v56 }
 0x150   :  { %v302_v63 = vadd.f32 -1.4531521, %v298_v59  ;;  %v287_v7 = vmul.f32 %v600_v60, %v279_v50 }
 0x151   :  { %v293_v9 = vsub.f32 2.0, %v289_v61  ;;  %601 = vrcp.f32 %v280_v62 }
 0x152   :  { %v306_v11 = vmul.f32 %v302_v63, %v294_v5  ;;  %v291_v12 = vsub.f32 2.0, %v287_v7  ;;  %603 = vpow2.f32 %v342_v17  ;;  %v346_v7 = vmul.f32 1.442695, %v340_v57 }
 0x153   :  { %v297_v13 = vmul.f32 %v598_v10, %v293_v9  ;;  %605 = vpow2.f32 %v348_v39 }
 0x154   :  { %v310_v14 = vadd.f32 1.4214138, %v306_v11  ;;  %v295_v15 = vmul.f32 %v600_v60, %v291_v12  ;;  %607 = vpow2.f32 %v344_v30 }
 0x155   :  { %v301_v19 = vmul.f32 1.0614054, %v297_v13  ;;  %609 = vpow2.f32 %v346_v7 }
 0x156   :  { %v314_v20 = vmul.f32 %v310_v14, %v294_v5  ;;  %v299_v21 = vmul.f32 1.0614054, %v295_v15 }
 0x157   :  { %v602_v54 = vpop.eup %601  ;;  %v305_v22 = vadd.f32 -1.4531521, %v301_v19 }
 0x158   :  { %v318_v23 = vadd.f32 -0.28449672, %v314_v20  ;;  %v303_v24 = vadd.f32 -1.4531521, %v299_v21  ;;  %v288_v26 = vmul.f32 %v602_v54, %v280_v62  ;;  %v604_v49 = vpop.eup %603 }
 0x159   :  { %v309_v28 = vmul.f32 %v305_v22, %v297_v13  ;;  %v606_v8 = vpop.eup %605 }
 0x15a   :  { %v322_v29 = vmul.f32 %v318_v23, %v294_v5  ;;  %v307_v31 = vmul.f32 %v303_v24, %v295_v15  ;;  %v292_v32 = vsub.f32 2.0, %v288_v26  ;;  %v608_v14 = vpop.eup %607  ;;  %v373_v24 = vmul.f32 0.5, %v740_v33 }
 0x15b   :  { %v313_v34 = vadd.f32 1.4214138, %v309_v28  ;;  %v610_v27 = vpop.eup %609  ;;  %v371_v28 = vmul.f32 0.5, %v742_v43  ;;  %v372_v33 = vmul.f32 0.5, %v752_v51 }
 0x15c   :  { %v326_v35 = vadd.f32 0.2548296, %v322_v29  ;;  %v311_v38 = vadd.f32 1.4214138, %v307_v31  ;;  %v296_v40 = vmul.f32 %v602_v54, %v292_v32 }
 0x15d   :  { %v317_v41 = vmul.f32 %v313_v34, %v297_v13 }
 0x15e   :  { %v330_v3 = vmul.f32 %v326_v35, %v294_v5  ;;  %v315_v46 = vmul.f32 %v311_v38, %v295_v15  ;;  %v300_v4 = vmul.f32 1.0614054, %v296_v40 }
 0x15f   :  { %v321_v47 = vadd.f32 -0.28449672, %v317_v41 }
 0x160   :  { %v350_v50 = vmul.f32 %v604_v49, %v330_v3  ;;  %v319_v52 = vadd.f32 -0.28449672, %v315_v46  ;;  %v304_v48 = vadd.f32 -1.4531521, %v300_v4  ;;  %v492_v46 = vld [vmem:[%s837_s5] sm:$0xf] }
 0x161   :  { %v325_v55 = vmul.f32 %v321_v47, %v297_v13  ;;  %562 = vmatpush.msk.msra.mxu2 %vm233_vm6, %v492_v46  ;;  %v441_v4 = vld [vmem:[%s838_s3 + $0x10] sm:$0xff]  ;;  %v440_v49 = vld [vmem:[%s838_s3 + $0x8] sm:$0xff]  ;;  %v439_v47 = vld [vmem:[%s838_s3] sm:$0xff] }
 0x162   :  { %v354_v58 = vsub.f32 1.0, %v350_v50  ;;  %v323_v10 = vmul.f32 %v319_v52, %v295_v15  ;;  %v308_v59 = vmul.f32 %v304_v48, %v296_v40  ;;  %563 = vmatmul.msk.f32.vlgmr.msra.gmra.mxu2 %vm156_vm4, %v663_v1  ;;  %569 = vmatpush.msra.mxu3 %v441_v4 }
 0x163   :  { %v329_v60 = vadd.f32 0.2548296, %v325_v55  ;;  %472 = vmatpush.msrb.mxu1 %v441_v4 }
 0x164   :  { %v362_v61 = vsub.f32 0.0, %v354_v58  ;;  %v327_v62 = vadd.f32 0.2548296, %v323_v10  ;;  %v312_v63 = vadd.f32 1.4214138, %v308_v59  ;;  %570 = vmatpush.msra.mxu3 %v440_v49 }
 0x165   :  { %v333_v5 = vmul.f32 %v329_v60, %v297_v13  ;;  %473 = vmatpush.msrb.mxu1 %v440_v49 }
 0x166   :  { %v366_v9 = vsel %vm358_vm10, %v354_v58, %v362_v61  ;;  %v331_v11 = vmul.f32 %v327_v62, %v295_v15  ;;  %v316_v12 = vmul.f32 %v312_v63, %v296_v40  ;;  %571 = vmatpush.msra.mxu3 %v439_v47 }
 0x167   :  { %v374_v17 = vadd.f32 1.0, %v366_v9  ;;  %v353_v56 = vmul.f32 %v606_v8, %v333_v5  ;;  %474 = vmatpush.msrb.mxu1 %v439_v47 }
 0x168   :  { %v351_v18 = vmul.f32 %v608_v14, %v331_v11  ;;  %v320_v19 = vadd.f32 -0.28449672, %v316_v12  ;;  %v577_v14 = vld [vmem:[%s836_s6] ss:$0 sm:$0xff] }
 0x169   :  { %v378_v20 = vmul.f32 %v374_v17, %v370_v16  ;;  %v357_v21 = vsub.f32 1.0, %v353_v56  ;;  %v578_v16 = vld [vmem:[%s839_s4] ss:$0 sm:$0xff] }
 0x16a   :  { %v355_v54 = vsub.f32 1.0, %v351_v18  ;;  %v324_v22 = vmul.f32 %v320_v19, %v296_v40  ;;  %564 = vmatmul.msk.f32.gmra.mxu2 %vm156_vm4, %v658_v0 }
 0x16b   :  { %382 = vst.msk [vmem:[#allocation3 + $0x2] sm:$0xff] %vm209_vm7, %v378_v20  ;;  %v365_v37 = vsub.f32 0.0, %v357_v21 }
 0x16c   :  { %v363_v13 = vsub.f32 0.0, %v355_v54  ;;  %v328_v15 = vadd.f32 0.2548296, %v324_v22 }
 0x16d   :  { %v369_v23 = vsel %vm361_vm11, %v357_v21, %v365_v37 }
 0x16e   :  { %v367_v36 = vsel %vm359_vm12, %v355_v54, %v363_v13  ;;  %v377_v25 = vadd.f32 1.0, %v369_v23  ;;  %v332_v26 = vmul.f32 %v328_v15, %v296_v40 }
 0x16f   :  { %v375_v29 = vadd.f32 1.0, %v367_v36 }
 0x170   :  { %v381_v31 = vmul.f32 %v377_v25, %v373_v24  ;;  %v352_v32 = vmul.f32 %v610_v27, %v332_v26 }
 0x171   :  { %v379_v34 = vmul.f32 %v375_v29, %v371_v28 }
 0x172   :  { %385 = vst.msk [vmem:[#allocation3 + $0x22] sm:$0xff] %vm209_vm7, %v381_v31  ;;  %v356_v35 = vsub.f32 1.0, %v352_v32  ;;  %v390_v3 = vld [vmem:[#allocation3 + $0x2] sm:$0xff]  ;;  %565 = vmatmul.msk.f32.gmra.mxu2 %vm156_vm4, %v682_v6 }
 0x173   :  { %383 = vst.msk [vmem:[#allocation3 + $0xa] sm:$0xff] %vm209_vm7, %v379_v34  ;;  %v386_v60 = vld [vmem:[#allocation3] sm:$0xff] }
 0x174   :  { %v364_v44 = vsub.f32 0.0, %v356_v35 }
 0x176   :  { %v368_v45 = vsel %vm360_vm13, %v356_v35, %v364_v44 }
 0x177   :  { %v376_v38 = vadd.f32 1.0, %v368_v45 }
 0x179   :  { %v380_v39 = vmul.f32 %v376_v38, %v372_v33  ;;  %v393_v41 = vld [vmem:[#allocation3 + $0x22] sm:$0xff] }
 0x17a   :  { %v395_v40 = vld [vmem:[#allocation3 + $0xc] sm:$0xff]  ;;  %v397_v53 = vld [vmem:[#allocation3 + $0x24] sm:$0xff]  ;;  %566 = vmatmul.msk.f32.gmra.mxu2 %vm156_vm4, %v668_v2 }
 0x17b   :  { %v391_v30 = vld [vmem:[#allocation3 + $0xa] sm:$0xff]  ;;  %384 = vst.msk [vmem:[#allocation3 + $0x1a] sm:$0xff] %vm209_vm7, %v380_v39  ;;  %420 = vrot.lane.b32.xlu0 %v395_v40, %s614_s2 }
 0x17c   :  { %404 = vrot.lane.b32.xlu2 %v391_v30, %s613_s9  ;;  %v394_v51 = vld [vmem:[#allocation3 + $0x4] sm:$0xff] }
 0x17d   :  { %v387_v50 = vld [vmem:[#allocation3 + $0x8] sm:$0xff] }
 0x182   :  { %v392_v43 = vld [vmem:[#allocation3 + $0x1a] sm:$0xff] }
 0x183   :  { %v396_v42 = vld [vmem:[#allocation3 + $0x1c] sm:$0xff]  ;;  %406 = vrot.lane.b32.xlu1 %v392_v43, %s613_s9  ;;  %408 = vrot.lane.b32.xlu0 %v393_v41, %s613_s9 }
 0x184   :  { %422 = vrot.lane.b32.xlu2 %v396_v42, %s614_s2  ;;  %v388_v0 = vld [vmem:[#allocation3 + $0x18] sm:$0xff]  ;;  %v389_v61 = vld [vmem:[#allocation3 + $0x20] sm:$0xff] }
 0x18b   :  { %424 = vrot.lane.b32.xlu1 %v397_v53, %s614_s2  ;;  %418 = vrot.lane.b32.xlu0 %v394_v51, %s614_s2 }
 0x18c   :  { %402 = vrot.lane.b32.xlu2 %v390_v3, %s613_s9 }
 0x1d6   :  { %v405_v1 = vpop.permute.xlu2 %404 }
 0x1d7   :  { %v431_v52 = vsel %vm209_vm7, %v387_v50, %v405_v1 }
 0x1de   :  { %v423_v57 = vpop.permute.xlu2 %422 }
 0x1e5   :  { %v529_v11 = vpop.f32.mrf.mxu2 }
 0x1e6   :  { %v403_v2 = vpop.permute.xlu2 %402  ;;  %v530_v13 = vadd.f32 %v577_v14, %v529_v11 }
 0x1e7   :  { %v430_v62 = vsel %vm209_vm7, %v386_v60, %v403_v2 }
 0x1ed   :  { %v421_v48 = vpop.permute.xlu0 %420  ;;  %v532_v12 = vpop.f32.mrf.mxu2 }
 0x1ee   :  { %v436_v55 = vsel %vm434_vm14, %v431_v52, %v421_v48  ;;  %v533_v17 = vadd.f32 %v577_v14, %v532_v12 }
 0x1ef   :  { %559 = vmatmul.msk.f32.vlgmr.msra.gmra.mxu3 %vm446_vm15, %v436_v55 }
 0x1f5   :  { %v407_v58 = vpop.permute.xlu1 %406  ;;  %v409_v10 = vpop.permute.xlu0 %408 }
 0x1f6   :  { %v432_v6 = vsel %vm209_vm7, %v388_v0, %v407_v58  ;;  %v433_v63 = vsel %vm209_vm7, %v389_v61, %v409_v10  ;;  %v535_v20 = vpop.f32.mrf.mxu2 }
 0x1f7   :  { %v437_v59 = vsel %vm434_vm14, %v432_v6, %v423_v57  ;;  %v536_v21 = vadd.f32 %v577_v14, %v535_v20 }
 0x1f8   :  { %560 = vmatmul.msk.f32.gmra.mxu3 %vm446_vm15, %v437_v59 }
 0x1fd   :  { %v425_v5 = vpop.permute.xlu1 %424  ;;  %v419_v7 = vpop.permute.xlu0 %418 }
 0x1fe   :  { %v435_v8 = vsel %vm434_vm14, %v430_v62, %v419_v7  ;;  %v438_v9 = vsel %vm434_vm14, %v433_v63, %v425_v5  ;;  %v538_v24 = vpop.f32.mrf.mxu2 }
 0x1ff   :  { %558 = vmatmul.msk.f32.vlgmr.msrb.gmra.mxu1 %vm446_vm15, %v435_v8  ;;  %v539_v25 = vadd.f32 %v577_v14, %v538_v24 }
 0x200   :  { %561 = vmatmul.msk.f32.gmra.mxu3 %vm446_vm15, %v438_v9 }
 0x272   :  { %v479_v56 = vpop.f32.mrf.mxu3 }
 0x273   :  { %v480_v18 = vadd.f32 %v578_v16, %v479_v56 }
 0x275   :  { %v542_v19 = vadd.f32 %v533_v17, %v480_v18 }
 0x277   :  { %546 = vst.msk [vmem:[%s840_s7 + $0x8] sm:$0xff] %vm209_vm7, %v542_v19 }
 0x27b   :  { %v482_v54 = vpop.f32.mrf.mxu3 }
 0x27c   :  { %v483_v22 = vadd.f32 %v578_v16, %v482_v54  ;;  %v476_v37 = vpop.f32.mrf.mxu1 }
 0x27d   :  { %v477_v15 = vadd.f32 %v578_v16, %v476_v37 }
 0x27e   :  { %v543_v23 = vadd.f32 %v536_v21, %v483_v22 }
 0x27f   :  { %v541_v36 = vadd.f32 %v530_v13, %v477_v15 }
 0x280   :  { %547 = vst.msk [vmem:[%s840_s7 + $0x10] sm:$0xff] %vm209_vm7, %v543_v23 }
 0x281   :  { %545 = vst.msk [vmem:[%s840_s7] sm:$0xff] %vm209_vm7, %v541_v36 }
 0x283   :  { %v485_v26 = vpop.f32.mrf.mxu3 }
 0x284   :  { %v486_v27 = vadd.f32 %v578_v16, %v485_v26 }
 0x286   :  { %v544_v28 = vadd.f32 %v539_v25, %v486_v27 }
 0x288   :  { %548 = vst.msk [vmem:[%s840_s7 + $0x18] sm:$0xff] %vm209_vm7, %v544_v28 }

</bundles_post_ra>
